<compile_context>
chip_gen: v6e
topology: v6e:2x2x1
jax: 0.10.0
libtpu: 0.0.40
codegen_flags: <defaults>
</compile_context>

<pallas_src>
import jax
import jax.numpy as jnp
from jax.experimental import pallas as pl
from jax.experimental.pallas import tpu as pltpu

_LANE = 128
_BF16_SUBLANE = 16


def _round_up(x, m):
    return ((x + m - 1) // m) * m


def _mlp2_kernel(x_ref, w1_ref, w2_ref, o_ref):
    # x arrives f32; cast to bf16 in-kernel (hides under the input DMA).
    x = x_ref[...].astype(jnp.bfloat16)
    # Layer 1: ReLU(x @ W1).  bf16 MXU operands, f32 accumulation.
    h = jnp.dot(x, w1_ref[...], preferred_element_type=jnp.float32)
    h = jnp.maximum(h, 0.0)  # f32 ReLU: portable (v5e has no bf16 VALU)
    # Layer 2: ReLU(h @ W2).  Output block is lane-dense (out dim padded to 128).
    y = jnp.dot(h.astype(jnp.bfloat16), w2_ref[...],
                preferred_element_type=jnp.float32)
    o_ref[...] = jnp.maximum(y, 0.0).astype(o_ref.dtype)


def prepare_generative_2l_params(w1_t, w2_t):
    """One-time parameter prep (hoisted out of the per-call forward path).

    w1_t: (input_dim, hid_dim1)   == nn.Linear W1.weight.T
    w2_t: (hid_dim1, output_dim)  == nn.Linear W2.weight.T

    Returns (w1b, w2b, output_dim) where
      w1b: (input_dim, hid_pad)  bf16, hidden dim zero-padded to 128 lanes
      w2b: (hid_pad,  out_pad)   bf16, hidden rows + output cols zero-padded.
    Padding is mathematically exact: zero hidden columns survive ReLU as
    zeros, zero W2 rows contribute 0, and the zero output columns are sliced
    off after the kernel.
    """
    input_dim, hid_dim1 = w1_t.shape
    hid_dim1_2, output_dim = w2_t.shape
    assert hid_dim1 == hid_dim1_2, (w1_t.shape, w2_t.shape)

    hid_pad = _round_up(hid_dim1, _LANE)
    out_pad = _round_up(output_dim, _LANE)

    if hid_pad != hid_dim1:
        w1_t = jnp.pad(w1_t, ((0, 0), (0, hid_pad - hid_dim1)))
        w2_t = jnp.pad(w2_t, ((0, hid_pad - hid_dim1), (0, 0)))  # rows at END
    if out_pad != output_dim:
        w2_t = jnp.pad(w2_t, ((0, 0), (0, out_pad - output_dim)))

    return w1_t.astype(jnp.bfloat16), w2_t.astype(jnp.bfloat16), output_dim


def generative_2l(x, w1b, w2b, output_dim, *, batch_tile=256):
    """Forward pass.  x: (B, input_dim) f32; w1b/w2b from prepare_...()."""
    B, input_dim = x.shape
    assert w1b.shape[0] == input_dim
    hid_pad = w1b.shape[1]
    out_pad = w2b.shape[1]

    # Batch tile: <=256 so moderate B yields >=2 grid steps (both v7x TCs get
    # work); multiple of 16 (bf16 sublane packing) whenever tiling happens.
    tb = min(B, batch_tile)
    if tb < B:
        tb = _round_up(tb, _BF16_SUBLANE)
    grid = (pl.cdiv(B, tb),)

    # Explicit scoped-VMEM budget from the actual resident footprint:
    # x/out double-buffered f32 tiles, weights (worst case) double-buffered
    # bf16, shapes padded to VMEM (8,128)/(16,128) tiles, plus headroom.
    x_buf = 2 * _round_up(tb, 8) * _round_up(input_dim, _LANE) * 4
    o_buf = 2 * _round_up(tb, 8) * out_pad * 4
    w_buf = 2 * (_round_up(input_dim, _BF16_SUBLANE) * hid_pad
                 + hid_pad * out_pad) * 2
    vmem_limit = min(64 * 1024 * 1024,
                     max(16 * 1024 * 1024, 2 * (x_buf + o_buf + w_buf)))

    flops = 2 * B * (input_dim * hid_pad + hid_pad * out_pad)
    bytes_accessed = (x.size * 4 + w1b.size * 2 + w2b.size * 2
                      + B * out_pad * 4)

    def build_call(single_buffer_weights):
        if single_buffer_weights:
            # Constant index_map -> double-buffering the weights is pointless;
            # single-buffer them to halve their resident VMEM footprint.
            w_specs = [
                pl.BlockSpec((input_dim, hid_pad), lambda i: (0, 0),
                             pipeline_mode=pl.Buffered(1)),
                pl.BlockSpec((hid_pad, out_pad), lambda i: (0, 0),
                             pipeline_mode=pl.Buffered(1)),
            ]
        else:
            w_specs = [
                pl.BlockSpec((input_dim, hid_pad), lambda i: (0, 0)),
                pl.BlockSpec((hid_pad, out_pad), lambda i: (0, 0)),
            ]
        return pl.pallas_call(
            _mlp2_kernel,
            out_shape=jax.ShapeDtypeStruct((B, out_pad), x.dtype),
            grid=grid,
            in_specs=[pl.BlockSpec((tb, input_dim), lambda i: (i, 0))] + w_specs,
            out_specs=pl.BlockSpec((tb, out_pad), lambda i: (i, 0)),
            compiler_params=pltpu.CompilerParams(
                dimension_semantics=("parallel",),
                vmem_limit_bytes=vmem_limit,
            ),
            cost_estimate=pl.CostEstimate(
                flops=flops, transcendentals=0,
                bytes_accessed=bytes_accessed),
        )

    try:
        out_padded = build_call(True)(x, w1b, w2b)
    except Exception:
        # pl.Buffered / pipeline_mode unsupported on this jax build: fall back
        # to default (double-buffered) weight specs — same semantics.
        out_padded = build_call(False)(x, w1b, w2b)

    # Lane-dense (B, out_pad) kernel output -> logical (B, output_dim).
    return out_padded[:, :output_dim]


def _torch_like_linear_init(key, in_features, out_features):
    """nn.Linear default init: U(-1/sqrt(in), 1/sqrt(in)); returned transposed
    as (in_features, out_features) for the kernel."""
    bound = 1.0 / jnp.sqrt(jnp.float32(in_features))
    w = jax.random.uniform(
        key, (out_features, in_features), dtype=jnp.float32,
        minval=-bound, maxval=bound)
    return w.T


if __name__ == "__main__":
    # Shapes consistent with the module: batch=8, input_dim=32, hid_dim1=64,
    # output_dim=16.
    B, input_dim, hid_dim1, output_dim = 8, 32, 64, 16

    key = jax.random.PRNGKey(0)
    kx, k1, k2, kx2 = jax.random.split(key, 4)

    x = jax.random.normal(kx, (B, input_dim), dtype=jnp.float32)
    w1_t = _torch_like_linear_init(k1, input_dim, hid_dim1)
    w2_t = _torch_like_linear_init(k2, hid_dim1, output_dim)

    # One-time parameter prep (pad + bf16 cast) outside the forward path.
    w1b, w2b, out_dim = prepare_generative_2l_params(w1_t, w2_t)

    out = generative_2l(x, w1b, w2b, out_dim)
    out = jax.block_until_ready(out)

    # Pure-JAX f32 reference of the forward semantics (bf16 MXU operands in
    # the kernel give ~1e-2 relative error, so the tolerance is loosened).
    ref = jnp.maximum(jnp.maximum(x @ w1_t, 0.0) @ w2_t, 0.0)
    assert out.shape == (B, output_dim)
    assert jnp.allclose(out, ref, atol=2e-2, rtol=2e-2), (
        float(jnp.max(jnp.abs(out - ref))))

    # Also exercise the multi-step tiled ("parallel") grid path.
    x_big = jax.random.normal(kx2, (48, input_dim), dtype=jnp.float32)
    out_big = jax.block_until_ready(
        generative_2l(x_big, w1b, w2b, out_dim, batch_tile=16))
    ref_big = jnp.maximum(jnp.maximum(x_big @ w1_t, 0.0) @ w2_t, 0.0)
    assert out_big.shape == (48, output_dim)
    assert jnp.allclose(out_big, ref_big, atol=2e-2, rtol=2e-2), (
        float(jnp.max(jnp.abs(out_big - ref_big))))

    print("KERNEL_OK")
</pallas_src>

<mosaic_0001>
module attributes {stable_mosaic.version = 11 : i64} {
  func.func @_mlp2_kernel(%arg0: i32, %arg1: memref<8x32xf32, #tpu.memory_space<vmem>>, %arg2: memref<32x128xbf16, #tpu.memory_space<vmem>>, %arg3: memref<128x128xbf16, #tpu.memory_space<vmem>>, %arg4: memref<8x128xf32, #tpu.memory_space<vmem>>) attributes {dimension_semantics = [#tpu.dimension_semantics<parallel>], iteration_bounds = array<i64: 1>, scalar_prefetch = 0 : i64, scratch_operands = 0 : i64, tpu.core_type = #tpu.core_type<tc>, window_params = [{transform_indices = @transform_0, window_bounds = array<i64: 8, 32>}, {pipeline_mode = #tpu.pipeline_mode<synchronous>, transform_indices = @transform_1, window_bounds = array<i64: 32, 128>}, {pipeline_mode = #tpu.pipeline_mode<synchronous>, transform_indices = @transform_2, window_bounds = array<i64: 128, 128>}, {transform_indices = @transform_3, window_bounds = array<i64: 8, 128>}]} {
    %c0 = arith.constant 0 : index
    %c0_0 = arith.constant 0 : index
    %0 = vector.load %arg1[%c0, %c0_0] : memref<8x32xf32, #tpu.memory_space<vmem>>, vector<8x32xf32>
    %1 = arith.truncf %0 : vector<8x32xf32> to vector<8x32xbf16>
    %c0_1 = arith.constant 0 : index
    %c0_2 = arith.constant 0 : index
    %2 = vector.load %arg2[%c0_1, %c0_2] : memref<32x128xbf16, #tpu.memory_space<vmem>>, vector<32x128xbf16>
    %cst = arith.constant dense<0.000000e+00> : vector<8x128xf32>
    %3 = tpu.matmul %1, %2, %cst {dimension_numbers = #tpu.dot_dimension_numbers<[1], [0], [0], [1], [0, 0, 1, 1], [], []>} : vector<8x32xbf16>, vector<32x128xbf16>, vector<8x128xf32> -> vector<8x128xf32>
    %cst_3 = arith.constant 0.000000e+00 : f32
    %4 = vector.broadcast %cst_3 : f32 to vector<8x128xf32>
    %5 = arith.maximumf %3, %4 : vector<8x128xf32>
    %6 = arith.truncf %5 : vector<8x128xf32> to vector<8x128xbf16>
    %c0_4 = arith.constant 0 : index
    %c0_5 = arith.constant 0 : index
    %7 = vector.load %arg3[%c0_4, %c0_5] : memref<128x128xbf16, #tpu.memory_space<vmem>>, vector<128x128xbf16>
    %cst_6 = arith.constant dense<0.000000e+00> : vector<8x128xf32>
    %8 = tpu.matmul %6, %7, %cst_6 {dimension_numbers = #tpu.dot_dimension_numbers<[1], [0], [0], [1], [0, 0, 1, 1], [], []>} : vector<8x128xbf16>, vector<128x128xbf16>, vector<8x128xf32> -> vector<8x128xf32>
    %cst_7 = arith.constant 0.000000e+00 : f32
    %9 = vector.broadcast %cst_7 : f32 to vector<8x128xf32>
    %10 = arith.maximumf %8, %9 : vector<8x128xf32>
    %c0_8 = arith.constant 0 : index
    %c0_9 = arith.constant 0 : index
    %11 = vector.load %arg4[%c0_8, %c0_9] : memref<8x128xf32, #tpu.memory_space<vmem>>, vector<8x128xf32>
    tpu.vector_store %arg4[%c0_8, %c0_9], %10 {strides = array<i32>} : memref<8x128xf32, #tpu.memory_space<vmem>>, vector<8x128xf32>,
    return
  }
  func.func @transform_0(%arg0: i32) -> (i32, i32) {
    %c0_i32 = arith.constant 0 : i32
    %c0_i32_0 = arith.constant 0 : i32
    return %arg0, %c0_i32 : i32, i32
  }
  func.func @transform_1(%arg0: i32) -> (i32, i32) {
    %c0_i32 = arith.constant 0 : i32
    %c0_i32_0 = arith.constant 0 : i32
    %c0_i32_1 = arith.constant 0 : i32
    return %c0_i32, %c0_i32_0 : i32, i32
  }
  func.func @transform_2(%arg0: i32) -> (i32, i32) {
    %c0_i32 = arith.constant 0 : i32
    %c0_i32_0 = arith.constant 0 : i32
    %c0_i32_1 = arith.constant 0 : i32
    return %c0_i32, %c0_i32_0 : i32, i32
  }
  func.func @transform_3(%arg0: i32) -> (i32, i32) {
    %c0_i32 = arith.constant 0 : i32
    %c0_i32_0 = arith.constant 0 : i32
    return %arg0, %c0_i32 : i32, i32
  }
}

module attributes {stable_mosaic.version = 11 : i64} {
  func.func @_mlp2_kernel(%arg0: i32, %arg1: memref<8x32xf32, #tpu.memory_space<vmem>>, %arg2: memref<32x128xbf16, #tpu.memory_space<vmem>>, %arg3: memref<128x128xbf16, #tpu.memory_space<vmem>>, %arg4: memref<8x128xf32, #tpu.memory_space<vmem>>) attributes {dimension_semantics = [#tpu.dimension_semantics<parallel>], iteration_bounds = array<i64: 1>, scalar_prefetch = 0 : i64, scratch_operands = 0 : i64, tpu.core_type = #tpu.core_type<tc>, window_params = [{transform_indices = @transform_0, window_bounds = array<i64: 8, 32>}, {pipeline_mode = #tpu.pipeline_mode<synchronous>, transform_indices = @transform_1, window_bounds = array<i64: 32, 128>}, {pipeline_mode = #tpu.pipeline_mode<synchronous>, transform_indices = @transform_2, window_bounds = array<i64: 128, 128>}, {transform_indices = @transform_3, window_bounds = array<i64: 8, 128>}]} {
    %c0 = arith.constant 0 : index
    %c0_0 = arith.constant 0 : index
    %0 = vector.load %arg1[%c0, %c0_0] : memref<8x32xf32, #tpu.memory_space<vmem>>, vector<8x32xf32>
    %1 = arith.truncf %0 : vector<8x32xf32> to vector<8x32xbf16>
    %c0_1 = arith.constant 0 : index
    %c0_2 = arith.constant 0 : index
    %2 = vector.load %arg2[%c0_1, %c0_2] : memref<32x128xbf16, #tpu.memory_space<vmem>>, vector<32x128xbf16>
    %cst = arith.constant dense<0.000000e+00> : vector<8x128xf32>
    %3 = tpu.matmul %1, %2, %cst {dimension_numbers = #tpu.dot_dimension_numbers<[1], [0], [0], [1], [0, 0, 1, 1], [], []>} : vector<8x32xbf16>, vector<32x128xbf16>, vector<8x128xf32> -> vector<8x128xf32>
    %cst_3 = arith.constant 0.000000e+00 : f32
    %4 = vector.broadcast %cst_3 : f32 to vector<8x128xf32>
    %5 = arith.maximumf %3, %4 : vector<8x128xf32>
    %6 = arith.truncf %5 : vector<8x128xf32> to vector<8x128xbf16>
    %c0_4 = arith.constant 0 : index
    %c0_5 = arith.constant 0 : index
    %7 = vector.load %arg3[%c0_4, %c0_5] : memref<128x128xbf16, #tpu.memory_space<vmem>>, vector<128x128xbf16>
    %cst_6 = arith.constant dense<0.000000e+00> : vector<8x128xf32>
    %8 = tpu.matmul %6, %7, %cst_6 {dimension_numbers = #tpu.dot_dimension_numbers<[1], [0], [0], [1], [0, 0, 1, 1], [], []>} : vector<8x128xbf16>, vector<128x128xbf16>, vector<8x128xf32> -> vector<8x128xf32>
    %cst_7 = arith.constant 0.000000e+00 : f32
    %9 = vector.broadcast %cst_7 : f32 to vector<8x128xf32>
    %10 = arith.maximumf %8, %9 : vector<8x128xf32>
    %c0_8 = arith.constant 0 : index
    %c0_9 = arith.constant 0 : index
    %11 = vector.load %arg4[%c0_8, %c0_9] : memref<8x128xf32, #tpu.memory_space<vmem>>, vector<8x128xf32>
    tpu.vector_store %arg4[%c0_8, %c0_9], %10 {strides = array<i32>} : memref<8x128xf32, #tpu.memory_space<vmem>>, vector<8x128xf32>,
    return
  }
  func.func @transform_0(%arg0: i32) -> (i32, i32) {
    %c0_i32 = arith.constant 0 : i32
    %c0_i32_0 = arith.constant 0 : i32
    return %arg0, %c0_i32 : i32, i32
  }
  func.func @transform_1(%arg0: i32) -> (i32, i32) {
    %c0_i32 = arith.constant 0 : i32
    %c0_i32_0 = arith.constant 0 : i32
    %c0_i32_1 = arith.constant 0 : i32
    return %c0_i32, %c0_i32_0 : i32, i32
  }
  func.func @transform_2(%arg0: i32) -> (i32, i32) {
    %c0_i32 = arith.constant 0 : i32
    %c0_i32_0 = arith.constant 0 : i32
    %c0_i32_1 = arith.constant 0 : i32
    return %c0_i32, %c0_i32_0 : i32, i32
  }
  func.func @transform_3(%arg0: i32) -> (i32, i32) {
    %c0_i32 = arith.constant 0 : i32
    %c0_i32_0 = arith.constant 0 : i32
    return %arg0, %c0_i32 : i32, i32
  }
}

</mosaic_0001>

<bundles_post_ra>
// kernel: tpu_custom_call.1
= control target key start
LH: loop header
LB: loop body
LE: loop exit
PB: predicated region body
PF: predicated region fallthrough
CT: control target
= control target key end

     0   :  { %8 = vsyncpa [#allocation3], 0  ;;  %s436_s0 = inlined_call_operand.hbm [shape: f32[8,32], index: 0, kind: input, shape index: {}]   ;;  %s437_s1 = inlined_call_operand.hbm [shape: bf16[32,128], index: 1, kind: input, shape index: {}]   ;;  %s438_s2 = inlined_call_operand.hbm [shape: bf16[128,128], index: 2, kind: input, shape index: {}]   ;;  %s439_s3 = inlined_call_operand.hbm [shape: f32[8,128], index: 3, kind: output, shape index: {}]  }
   0x1   :  { %9 = vsyncpa [#allocation6], 0 }
   0x2   :  { %10 = vsyncpa [#allocation4], 0  ;;  %s396_s12 = smov [#allocation5]  }
   0x3   :  { %s26_s13 = sshll.u32 %s396_s12, 4  ;;  %s27_s13 = int_to_ptr.vmem [resolvable:$true] %s26_s13 }
   0x4   :  { %s318_s14 = scalar_lea.vmem %s27_s13, 256  ;;  %p323_p1 = scmp.lt.s32.totalorder %s27_s13, %s27_s13 }
   0x5   :  { %p319_p0 = scmp.ne.s32.totalorder %s27_s13, %s318_s14  ;;  %p324_p2 = scmp.lt.s32.totalorder %s318_s14, %s318_s14 }
   0x7   :  { %p325_p3 = por %p324_p2, %p323_p1 }
   0x9   :  { %p326_p4 = pnand %p325_p3, %p319_p0 }
   0xb   :  { %329 = shalt.err (!%p326_p4)
}
   0xc   :  { %s397_s15 = smov 64   ;;  %s398_s16 = smov 4  }
   0xd   :  { %32 = dma.hbm_to_vmem [thread:$0]  %s437_s1, 256, %s27_s13, [#allocation6], %s397_s15, %s397_s15, %s398_s16  }
   0xe   :  { %s399_s19 = smov [#allocation2]   ;;  %s400_s21 = smov [#allocation7]  }
   0xf   :  { %s17_s20 = sshll.u32 %s399_s19, 4  ;;  %s38_s22 = sshll.u32 %s400_s21, 4  ;;  %s18_s20 = int_to_ptr.vmem [resolvable:$true] %s17_s20  ;;  %s39_s22 = int_to_ptr.vmem [resolvable:$true] %s38_s22 }
  0x10   :  { %s338_s23 = scalar_lea.vmem %s18_s20, 128  ;;  %p343_p6 = scmp.lt.s32.totalorder %s18_s20, %s18_s20 }
  0x11   :  { %p339_p5 = scmp.ne.s32.totalorder %s18_s20, %s338_s23  ;;  %p344_p7 = scmp.lt.s32.totalorder %s338_s23, %s338_s23 }
  0x13   :  { %p345_p8 = por %p344_p7, %p343_p6 }
  0x15   :  { %p346_p9 = pnand %p345_p8, %p339_p5 }
  0x17   :  { %349 = shalt.err (!%p346_p9)
}
  0x18   :  { %20 = dma.hbm_to_vmem [thread:$0]  %s436_s0, 128, %s18_s20, [#allocation3]  }
  0x19   :  { %s358_s26 = scalar_lea.vmem %s39_s22, 1024  ;;  %p363_p11 = scmp.lt.s32.totalorder %s39_s22, %s39_s22 }
  0x1a   :  { %p359_p10 = scmp.ne.s32.totalorder %s39_s22, %s358_s26  ;;  %p364_p12 = scmp.lt.s32.totalorder %s358_s26, %s358_s26 }
  0x1c   :  { %p365_p13 = por %p364_p12, %p363_p11 }
  0x1e   :  { %p366_p0 = pnand %p365_p13, %p359_p10 }
  0x20   :  { %369 = shalt.err (!%p366_p0)
}
  0x21   :  { %44 = dma.hbm_to_vmem [thread:$0]  %s438_s2, 1024, %s39_s22, [#allocation6], %s397_s15, %s397_s15, %s398_s16  }
  0x22   :  { %390 = dma.done.wait [#allocation3], 128  }
  0x23   :  { %391 = vsyncadd [#allocation3], 4294967168 }
  0x24   :  { %392 = dma.done.wait [#allocation6], 1280  }
  0x25   :  { %393 = vsyncadd [#allocation6], 4294966016  ;;  %v401_v0 = vmov 0.0   ;;  %vm402_vm0 = vmmov 0   ;;  %v300_v1 = vld [vmem:[#allocation5 + $0x8] sm:$0xff]   ;;  %v301_v2 = vld [vmem:[#allocation5] sm:$0xff]  }
  0x26   :  { %264 = vmatprep.subr.bf16.mxu0 %v401_v0  ;;  %268 = vmatprep.mubr.msk.bf16.mxu0 %vm402_vm0, %v401_v0  ;;  %v55_v3 = vld [vmem:[#allocation2] sm:$0xff]  ;;  %v302_v4 = vld [vmem:[#allocation7 + $0x38] sm:$0xff]   ;;  %v303_v6 = vld [vmem:[#allocation7 + $0x30] sm:$0xff]   ;;  %vm73_vm1 = vcmask 261120   ;;  %s403_s0 = smov [#allocation8]  }
  0x27   :  { %272 = vmatprep.subr.bf16.mxu1 %v401_v0  ;;  %288 = vmatprep.mubr.msk.bf16.mxu1 %vm402_vm0, %v401_v0  ;;  %v56_v5 = vpack.c.bf16 %v55_v3, %v55_v3  ;;  %v304_v7 = vld [vmem:[#allocation7 + $0x28] sm:$0xff]   ;;  %v305_v8 = vld [vmem:[#allocation7 + $0x20] sm:$0xff]   ;;  %v306_v9 = vld [vmem:[#allocation7 + $0x18] sm:$0xff]   ;;  %s231_s2 = sshll.u32 %s403_s0, 4  ;;  %s232_s2 = int_to_ptr.vmem [resolvable:$true] %s231_s2 }
  0x28   :  { %265 = vmatpush3.bf16.msra.mxu0 %v300_v1  ;;  %273 = vmatpush3.bf16.msra.mxu1 %v302_v4  ;;  %v307_v10 = vld [vmem:[#allocation7 + $0x10] sm:$0xff]   ;;  %v308_v11 = vld [vmem:[#allocation7 + $0x8] sm:$0xff]   ;;  %v309_v12 = vld [vmem:[#allocation7] sm:$0xff]   ;;  %s370_s28 = scalar_lea.vmem %s232_s2, 128  ;;  %p375_p2 = scmp.lt.s32.totalorder %s232_s2, %s232_s2 }
  0x29   :  { %266 = vmatprep.subr.bf16.mxu0 %v401_v0  ;;  %274 = vmatprep.subr.bf16.mxu1 %v401_v0  ;;  %p371_p1 = scmp.ne.s32.totalorder %s232_s2, %s370_s28  ;;  %p376_p3 = scmp.lt.s32.totalorder %s370_s28, %s370_s28 }
  0x2b   :  { %p377_p4 = por %p376_p3, %p375_p2 }
  0x2c   :  { %267 = vmatpush3.bf16.msra.mxu0 %v301_v2  ;;  %275 = vmatpush3.bf16.msra.mxu1 %v303_v6 }
  0x2d   :  { %276 = vmatprep.subr.bf16.mxu1 %v401_v0  ;;  %p378_p5 = pnand %p377_p4, %p371_p1 }
  0x2f   :  { %269 = vmatmul.mubr.msk.bf16.vlgmr.msra.gmra.mxu0 %vm73_vm1, %v56_v5 }
  0x30   :  { %277 = vmatpush3.bf16.msra.mxu1 %v304_v7 }
  0x31   :  { %278 = vmatprep.subr.bf16.mxu1 %v401_v0 }
  0x34   :  { %279 = vmatpush3.bf16.msra.mxu1 %v305_v8 }
  0x35   :  { %280 = vmatprep.subr.bf16.mxu1 %v401_v0 }
  0x38   :  { %281 = vmatpush3.bf16.msra.mxu1 %v306_v9 }
  0x39   :  { %282 = vmatprep.subr.bf16.mxu1 %v401_v0 }
  0x3c   :  { %283 = vmatpush3.bf16.msra.mxu1 %v307_v10 }
  0x3d   :  { %284 = vmatprep.subr.bf16.mxu1 %v401_v0 }
  0x40   :  { %285 = vmatpush3.bf16.msra.mxu1 %v308_v11 }
  0x41   :  { %286 = vmatprep.subr.bf16.mxu1 %v401_v0 }
  0x44   :  { %287 = vmatpush3.bf16.msra.mxu1 %v309_v12 }
  0xef   :  { %v111_v13 = vpop.f32.mrf.mxu0 }
  0xf0   :  { %v117_v14 = vmax.f32 %v111_v13, 0.0 }
  0xf1   :  { %v270_v15 = vpop.f32.mrf.mxu0 }
  0xf2   :  { %v118_v16 = vpack.c.bf16 %v117_v14, %v117_v14 }
  0xf3   :  { %v114_v17 = vpop.f32.mrf.mxu0 }
  0xf4   :  { %289 = vmatmul.mubr.bf16.vlgmr.msra.gmra.mxu1 %v118_v16 }
  0xf5   :  { %v271_v18 = vpop.f32.mrf.mxu0 }
 0x1b4   :  { %v217_v19 = vpop.f32.mrf.mxu1 }
 0x1b5   :  { %v223_v20 = vmax.f32 %v217_v19, 0.0 }
 0x1b6   :  { %v290_v21 = vpop.f32.mrf.mxu1 }
 0x1b7   :  { %224 = vst [vmem:[#allocation8] sm:$0xff] %v223_v20 }
 0x1b8   :  { %v220_v22 = vpop.f32.mrf.mxu1 }
 0x1b9   :  { %381 = shalt.err (!%p378_p5)
}
 0x1ba   :  { %234 = dma.vmem_to_hbm [thread:$0]  %s232_s2, 128, %s439_s3, [#allocation4]   ;;  %v291_v23 = vpop.f32.mrf.mxu1 }
 0x1bb   :  { %394 = dma.done.wait [#allocation4], 128  }
 0x1bc   :  { %395 = vsyncadd [#allocation4], 4294967168 }
 0x1bd   :  { %238 = vsyncpa [#allocation3], 1 }
 0x1be   :  { %239 = vsyncpa [#allocation6], 1 }
 0x1bf   :  { %240 = vsyncpa [#allocation4], 1 }

// kernel: tpu_custom_call.1
= control target key start
LH: loop header
LB: loop body
LE: loop exit
PB: predicated region body
PF: predicated region fallthrough
CT: control target
= control target key end

     0   :  { %8 = vsyncpa [#allocation3], 0  ;;  %s436_s0 = inlined_call_operand.hbm [shape: f32[8,32], index: 0, kind: input, shape index: {}]   ;;  %s437_s1 = inlined_call_operand.hbm [shape: bf16[32,128], index: 1, kind: input, shape index: {}]   ;;  %s438_s2 = inlined_call_operand.hbm [shape: bf16[128,128], index: 2, kind: input, shape index: {}]   ;;  %s439_s3 = inlined_call_operand.hbm [shape: f32[8,128], index: 3, kind: output, shape index: {}]  }
   0x1   :  { %9 = vsyncpa [#allocation6], 0 }
   0x2   :  { %10 = vsyncpa [#allocation4], 0  ;;  %s396_s12 = smov [#allocation5]  }
   0x3   :  { %s26_s13 = sshll.u32 %s396_s12, 4  ;;  %s27_s13 = int_to_ptr.vmem [resolvable:$true] %s26_s13 }
   0x4   :  { %s318_s14 = scalar_lea.vmem %s27_s13, 256  ;;  %p323_p1 = scmp.lt.s32.totalorder %s27_s13, %s27_s13 }
   0x5   :  { %p319_p0 = scmp.ne.s32.totalorder %s27_s13, %s318_s14  ;;  %p324_p2 = scmp.lt.s32.totalorder %s318_s14, %s318_s14 }
   0x7   :  { %p325_p3 = por %p324_p2, %p323_p1 }
   0x9   :  { %p326_p4 = pnand %p325_p3, %p319_p0 }
   0xb   :  { %329 = shalt.err (!%p326_p4)
}
   0xc   :  { %s397_s15 = smov 64   ;;  %s398_s16 = smov 4  }
   0xd   :  { %32 = dma.hbm_to_vmem [thread:$0]  %s437_s1, 256, %s27_s13, [#allocation6], %s397_s15, %s397_s15, %s398_s16  }
   0xe   :  { %s399_s19 = smov [#allocation2]   ;;  %s400_s21 = smov [#allocation7]  }
   0xf   :  { %s17_s20 = sshll.u32 %s399_s19, 4  ;;  %s38_s22 = sshll.u32 %s400_s21, 4  ;;  %s18_s20 = int_to_ptr.vmem [resolvable:$true] %s17_s20  ;;  %s39_s22 = int_to_ptr.vmem [resolvable:$true] %s38_s22 }
  0x10   :  { %s338_s23 = scalar_lea.vmem %s18_s20, 128  ;;  %p343_p6 = scmp.lt.s32.totalorder %s18_s20, %s18_s20 }
  0x11   :  { %p339_p5 = scmp.ne.s32.totalorder %s18_s20, %s338_s23  ;;  %p344_p7 = scmp.lt.s32.totalorder %s338_s23, %s338_s23 }
  0x13   :  { %p345_p8 = por %p344_p7, %p343_p6 }
  0x15   :  { %p346_p9 = pnand %p345_p8, %p339_p5 }
  0x17   :  { %349 = shalt.err (!%p346_p9)
}
  0x18   :  { %20 = dma.hbm_to_vmem [thread:$0]  %s436_s0, 128, %s18_s20, [#allocation3]  }
  0x19   :  { %s358_s26 = scalar_lea.vmem %s39_s22, 1024  ;;  %p363_p11 = scmp.lt.s32.totalorder %s39_s22, %s39_s22 }
  0x1a   :  { %p359_p10 = scmp.ne.s32.totalorder %s39_s22, %s358_s26  ;;  %p364_p12 = scmp.lt.s32.totalorder %s358_s26, %s358_s26 }
  0x1c   :  { %p365_p13 = por %p364_p12, %p363_p11 }
  0x1e   :  { %p366_p0 = pnand %p365_p13, %p359_p10 }
  0x20   :  { %369 = shalt.err (!%p366_p0)
}
  0x21   :  { %44 = dma.hbm_to_vmem [thread:$0]  %s438_s2, 1024, %s39_s22, [#allocation6], %s397_s15, %s397_s15, %s398_s16  }
  0x22   :  { %390 = dma.done.wait [#allocation3], 128  }
  0x23   :  { %391 = vsyncadd [#allocation3], 4294967168 }
  0x24   :  { %392 = dma.done.wait [#allocation6], 1280  }
  0x25   :  { %393 = vsyncadd [#allocation6], 4294966016  ;;  %v401_v0 = vmov 0.0   ;;  %vm402_vm0 = vmmov 0   ;;  %v300_v1 = vld [vmem:[#allocation5 + $0x8] sm:$0xff]   ;;  %v301_v2 = vld [vmem:[#allocation5] sm:$0xff]  }
  0x26   :  { %264 = vmatprep.subr.bf16.mxu0 %v401_v0  ;;  %268 = vmatprep.mubr.msk.bf16.mxu0 %vm402_vm0, %v401_v0  ;;  %v55_v3 = vld [vmem:[#allocation2] sm:$0xff]  ;;  %v302_v4 = vld [vmem:[#allocation7 + $0x38] sm:$0xff]   ;;  %v303_v6 = vld [vmem:[#allocation7 + $0x30] sm:$0xff]   ;;  %vm73_vm1 = vcmask 261120   ;;  %s403_s0 = smov [#allocation8]  }
  0x27   :  { %272 = vmatprep.subr.bf16.mxu1 %v401_v0  ;;  %288 = vmatprep.mubr.msk.bf16.mxu1 %vm402_vm0, %v401_v0  ;;  %v56_v5 = vpack.c.bf16 %v55_v3, %v55_v3  ;;  %v304_v7 = vld [vmem:[#allocation7 + $0x28] sm:$0xff]   ;;  %v305_v8 = vld [vmem:[#allocation7 + $0x20] sm:$0xff]   ;;  %v306_v9 = vld [vmem:[#allocation7 + $0x18] sm:$0xff]   ;;  %s231_s2 = sshll.u32 %s403_s0, 4  ;;  %s232_s2 = int_to_ptr.vmem [resolvable:$true] %s231_s2 }
  0x28   :  { %265 = vmatpush3.bf16.msra.mxu0 %v300_v1  ;;  %273 = vmatpush3.bf16.msra.mxu1 %v302_v4  ;;  %v307_v10 = vld [vmem:[#allocation7 + $0x10] sm:$0xff]   ;;  %v308_v11 = vld [vmem:[#allocation7 + $0x8] sm:$0xff]   ;;  %v309_v12 = vld [vmem:[#allocation7] sm:$0xff]   ;;  %s370_s28 = scalar_lea.vmem %s232_s2, 128  ;;  %p375_p2 = scmp.lt.s32.totalorder %s232_s2, %s232_s2 }
  0x29   :  { %266 = vmatprep.subr.bf16.mxu0 %v401_v0  ;;  %274 = vmatprep.subr.bf16.mxu1 %v401_v0  ;;  %p371_p1 = scmp.ne.s32.totalorder %s232_s2, %s370_s28  ;;  %p376_p3 = scmp.lt.s32.totalorder %s370_s28, %s370_s28 }
  0x2b   :  { %p377_p4 = por %p376_p3, %p375_p2 }
  0x2c   :  { %267 = vmatpush3.bf16.msra.mxu0 %v301_v2  ;;  %275 = vmatpush3.bf16.msra.mxu1 %v303_v6 }
  0x2d   :  { %276 = vmatprep.subr.bf16.mxu1 %v401_v0  ;;  %p378_p5 = pnand %p377_p4, %p371_p1 }
  0x2f   :  { %269 = vmatmul.mubr.msk.bf16.vlgmr.msra.gmra.mxu0 %vm73_vm1, %v56_v5 }
  0x30   :  { %277 = vmatpush3.bf16.msra.mxu1 %v304_v7 }
  0x31   :  { %278 = vmatprep.subr.bf16.mxu1 %v401_v0 }
  0x34   :  { %279 = vmatpush3.bf16.msra.mxu1 %v305_v8 }
  0x35   :  { %280 = vmatprep.subr.bf16.mxu1 %v401_v0 }
  0x38   :  { %281 = vmatpush3.bf16.msra.mxu1 %v306_v9 }
  0x39   :  { %282 = vmatprep.subr.bf16.mxu1 %v401_v0 }
  0x3c   :  { %283 = vmatpush3.bf16.msra.mxu1 %v307_v10 }
  0x3d   :  { %284 = vmatprep.subr.bf16.mxu1 %v401_v0 }
  0x40   :  { %285 = vmatpush3.bf16.msra.mxu1 %v308_v11 }
  0x41   :  { %286 = vmatprep.subr.bf16.mxu1 %v401_v0 }
  0x44   :  { %287 = vmatpush3.bf16.msra.mxu1 %v309_v12 }
  0xef   :  { %v111_v13 = vpop.f32.mrf.mxu0 }
  0xf0   :  { %v117_v14 = vmax.f32 %v111_v13, 0.0 }
  0xf1   :  { %v270_v15 = vpop.f32.mrf.mxu0 }
  0xf2   :  { %v118_v16 = vpack.c.bf16 %v117_v14, %v117_v14 }
  0xf3   :  { %v114_v17 = vpop.f32.mrf.mxu0 }
  0xf4   :  { %289 = vmatmul.mubr.bf16.vlgmr.msra.gmra.mxu1 %v118_v16 }
  0xf5   :  { %v271_v18 = vpop.f32.mrf.mxu0 }
 0x1b4   :  { %v217_v19 = vpop.f32.mrf.mxu1 }
 0x1b5   :  { %v223_v20 = vmax.f32 %v217_v19, 0.0 }
 0x1b6   :  { %v290_v21 = vpop.f32.mrf.mxu1 }
 0x1b7   :  { %224 = vst [vmem:[#allocation8] sm:$0xff] %v223_v20 }
 0x1b8   :  { %v220_v22 = vpop.f32.mrf.mxu1 }
 0x1b9   :  { %381 = shalt.err (!%p378_p5)
}
 0x1ba   :  { %234 = dma.vmem_to_hbm [thread:$0]  %s232_s2, 128, %s439_s3, [#allocation4]   ;;  %v291_v23 = vpop.f32.mrf.mxu1 }
 0x1bb   :  { %394 = dma.done.wait [#allocation4], 128  }
 0x1bc   :  { %395 = vsyncadd [#allocation4], 4294967168 }
 0x1bd   :  { %238 = vsyncpa [#allocation3], 1 }
 0x1be   :  { %239 = vsyncpa [#allocation6], 1 }
 0x1bf   :  { %240 = vsyncpa [#allocation4], 1 }

</bundles_post_ra>
